<compile_context>
chip_gen: v5e
topology: v5e:2x2
jax: 0.10.0
libtpu: 0.0.40
codegen_flags: <defaults>
</compile_context>

<pallas_src>
import jax
import jax.numpy as jnp
from jax.experimental import pallas as pl
from jax.experimental.pallas import tpu as pltpu


def _identity_flow_kernel(z_ref, out_ref, logdet_ref):
    # z_ref / out_ref: (TB, TD) tile of the flattened (B, D) input/output.
    # logdet_ref:      (TB, 1) per-sample log|det J| for this batch tile.
    # Identity pass-through copy (output HBM buffer is aliased to the input,
    # so this is an in-place refresh, not a second stream).
    out_ref[...] = z_ref[...]

    # Jacobian of the identity is I -> log|det| == 0 exactly. Write it once
    # per batch tile (on the first feature step) as a dense (TB, 1) block.
    @pl.when(pl.program_id(1) == 0)
    def _():
        logdet_ref[...] = jnp.zeros_like(logdet_ref)


def _pick_tile(n, unit, cap):
    """Largest multiple of `unit` that divides n and is <= cap; full axis if
    n is not unit-aligned (full-extent blocks are always legal)."""
    if n % unit != 0:
        return n
    t = min(n, (cap // unit) * unit)
    t = max(t, unit)
    while n % t != 0:
        t -= unit
    return t


def flow_forward(z):
    """Generic Flow forward: returns (z_transformed, log_abs_det).

    z: (B, ...) array, first dimension is the batch dim.
    returns: (z_out with same shape/dtype, logdet of shape (B,), float32)
    """
    B = z.shape[0]
    D = 1
    for s in z.shape[1:]:
        D *= s
    z2d = z.reshape(B, D)

    # Sublane alignment depends on dtype packing (f32: 8, bf16: 16, int8: 32).
    itemsize = jnp.dtype(z.dtype).itemsize
    sublane = max(8, 32 // max(itemsize, 1))

    # Tile sizes: big enough to amortize the ~0.35 us per-step pipeline
    # overhead, small enough that double-buffered in+out tiles fit the scoped
    # VMEM default on every generation (v5e 16 MiB / v6e 32 MiB / v7x 32 MiB).
    tb = _pick_tile(B, sublane, 256)   # batch tile (sublane-aligned or full)
    td = _pick_tile(D, 128, 2048)      # feature tile (lane-aligned or full)
    nb = B // tb
    nd = D // td

    out2d, logdet2d = pl.pallas_call(
        _identity_flow_kernel,
        out_shape=(
            jax.ShapeDtypeStruct((B, D), z.dtype),
            jax.ShapeDtypeStruct((B, 1), jnp.float32),
        ),
        grid_spec=pltpu.PrefetchScalarGridSpec(
            num_scalar_prefetch=0,
            grid=(nb, nd),
            in_specs=[pl.BlockSpec((tb, td), lambda b, d: (b, d))],
            out_specs=[
                pl.BlockSpec((tb, td), lambda b, d: (b, d)),
                pl.BlockSpec((tb, 1), lambda b, d: (b, 0)),
            ],
        ),
        # Alias the flattened input buffer to the transformed output so the
        # pass-through does not round-trip a second HBM allocation.
        input_output_aliases={0: 0},
        compiler_params=pltpu.CompilerParams(
            dimension_semantics=("parallel", "arbitrary"),
        ),
    )(z2d)

    return out2d.reshape(z.shape), logdet2d.reshape(B)


if __name__ == "__main__":
    key = jax.random.PRNGKey(0)
    # Small shapes consistent with a typical flow input: batch=2, C=4, 16x16.
    x = jax.random.normal(key, (2, 4, 16, 16), dtype=jnp.float32)

    z_out, logdet = flow_forward(x)
    z_out = jax.block_until_ready(z_out)
    logdet = jax.block_until_ready(logdet)

    # Sanity checks on the Flow contract.
    assert z_out.shape == x.shape and z_out.dtype == x.dtype
    assert logdet.shape == (x.shape[0],)
    assert bool(jnp.allclose(z_out, x))
    assert bool(jnp.allclose(logdet, jnp.zeros(x.shape[0], jnp.float32)))

    print("KERNEL_OK")
</pallas_src>

<mosaic_0001>
module attributes {stable_mosaic.version = 11 : i64} {
  func.func @_identity_flow_kernel(%arg0: i32, %arg1: i32, %arg2: memref<2x1024xf32, #tpu.memory_space<vmem>>, %arg3: memref<2x1024xf32, #tpu.memory_space<vmem>>, %arg4: memref<2x1xf32, #tpu.memory_space<vmem>>) attributes {dimension_semantics = [#tpu.dimension_semantics<parallel>, #tpu.dimension_semantics<arbitrary>], iteration_bounds = array<i64: 1, 1>, scalar_prefetch = 0 : i64, scratch_operands = 0 : i64, tpu.core_type = #tpu.core_type<tc>, window_params = [{transform_indices = @transform_0, window_bounds = array<i64: 2, 1024>}, {transform_indices = @transform_1, window_bounds = array<i64: 2, 1024>}, {transform_indices = @transform_2, window_bounds = array<i64: 2, 1>}]} {
    %c0 = arith.constant 0 : index
    %c0_0 = arith.constant 0 : index
    %0 = vector.load %arg2[%c0, %c0_0] : memref<2x1024xf32, #tpu.memory_space<vmem>>, vector<2x1024xf32>
    %c0_1 = arith.constant 0 : index
    %c0_2 = arith.constant 0 : index
    %1 = vector.load %arg3[%c0_1, %c0_2] : memref<2x1024xf32, #tpu.memory_space<vmem>>, vector<2x1024xf32>
    tpu.vector_store %arg3[%c0_1, %c0_2], %0 {strides = array<i32>} : memref<2x1024xf32, #tpu.memory_space<vmem>>, vector<2x1024xf32>,
    %c0_i32 = arith.constant 0 : i32
    %2 = arith.cmpi eq, %arg1, %c0_i32 : i32
    %3 = arith.extui %2 : i1 to i32
    %c0_i32_3 = arith.constant 0 : i32
    %4 = arith.cmpi ne, %3, %c0_i32_3 : i32
    scf.if %4 {
      %cst = arith.constant 0.000000e+00 : f32
      %5 = vector.broadcast %cst : f32 to vector<2x1xf32>
      %c0_4 = arith.constant 0 : index
      %c0_5 = arith.constant 0 : index
      %6 = vector.load %arg4[%c0_4, %c0_5] : memref<2x1xf32, #tpu.memory_space<vmem>>, vector<2x1xf32>
      tpu.vector_store %arg4[%c0_4, %c0_5], %5 {strides = array<i32>} : memref<2x1xf32, #tpu.memory_space<vmem>>, vector<2x1xf32>,
    } else {
    }
    return
  }
  func.func @transform_0(%arg0: i32, %arg1: i32) -> (i32, i32) {
    %c0_i32 = arith.constant 0 : i32
    return %arg0, %arg1 : i32, i32
  }
  func.func @transform_1(%arg0: i32, %arg1: i32) -> (i32, i32) {
    %c0_i32 = arith.constant 0 : i32
    return %arg0, %arg1 : i32, i32
  }
  func.func @transform_2(%arg0: i32, %arg1: i32) -> (i32, i32) {
    %c0_i32 = arith.constant 0 : i32
    %c0_i32_0 = arith.constant 0 : i32
    return %arg0, %c0_i32 : i32, i32
  }
}

</mosaic_0001>

<bundles_post_ra>
// kernel: tpu_custom_call.1
= control target key start
LH: loop header
LB: loop body
LE: loop exit
PB: predicated region body
PF: predicated region fallthrough
CT: control target
= control target key end

     0   :  { %vm18_vm0 = vcmask 1024   ;;  %v29_v2 = vmov 0.0   ;;  %s60_s0 = inlined_call_operand.vmem [shape: f32[2,1024], index: 0, kind: input, shape index: {}, may-alias: {0,1}]   ;;  %s61_s1 = inlined_call_operand.vmem [shape: f32[2,1024], index: 1, kind: output, shape index: {0}, may-alias: {0,1}]   ;;  %s62_s2 = inlined_call_operand.vmem [shape: f32[2,1], index: 2, kind: output, shape index: {1}]  }
   0x1   :  { %v10_v0 = vld [vmem:[%s60_s0] sm:$0xff]  ;;  %v11_v1 = vld [vmem:[%s60_s0 + $0x8] sm:$0xff]  ;;  %19 = vst.msk [vmem:[%s62_s2] sm:$0x3] %vm18_vm0, %v29_v2 }
   0x2   :  { %12 = vst [vmem:[%s61_s1] sm:$0xff] %v10_v0 }
   0x3   :  { %13 = vst [vmem:[%s61_s1 + $0x8] sm:$0xff] %v11_v1 }

</bundles_post_ra>
